<compile_context>
chip_gen: v7x
topology: tpu7x:2x2x1
jax: 0.10.0
libtpu: 0.0.40
codegen_flags: <defaults>
</compile_context>

<pallas_src>
import jax
import jax.numpy as jnp
from jax.experimental import pallas as pl
from jax.experimental.pallas import tpu as pltpu


def actor_kernel(x_ref,
                 w1_ref, b1_ref,
                 w2_ref, b2_ref,
                 w3_ref, b3_ref,
                 w4_ref, b4_ref,
                 o_ref):
    # Fused MLP hot path: 4 bf16 matmuls on the MXU (f32 accumulate),
    # bias/ReLU on the VPU in f32, tanh on the EUP, everything VMEM-resident.
    x = x_ref[...]  # bf16 (tm, din)

    h = jnp.dot(x, w1_ref[...], preferred_element_type=jnp.float32) + b1_ref[...]
    h = jnp.maximum(h, 0.0)

    h = jnp.dot(h.astype(jnp.bfloat16), w2_ref[...],
                preferred_element_type=jnp.float32) + b2_ref[...]
    h = jnp.maximum(h, 0.0)

    h = jnp.dot(h.astype(jnp.bfloat16), w3_ref[...],
                preferred_element_type=jnp.float32) + b3_ref[...]
    h = jnp.maximum(h, 0.0)

    a = jnp.dot(h.astype(jnp.bfloat16), w4_ref[...],
                preferred_element_type=jnp.float32) + b4_ref[...]
    o_ref[...] = jnp.tanh(a).astype(o_ref.dtype)  # lane-dense (tm, 128) store


def _round_up(x, m):
    return (x + m - 1) // m * m


def deterministic_actor_forward(obs, params, *, tm=256, lane_pad=128):
    """obs: (B, dimo+dimg) float32. params: dict of pre-transposed weights/biases.

    tm: target batch tile (rows per grid step). Ragged / small batches are
    zero-padded in the wrapper and sliced back afterwards.
    """
    B, din = obs.shape
    H = params["w1"].shape[1]
    dima = params["w4"].shape[1]
    dima_p = _round_up(dima, lane_pad)  # lane-dense output width

    # Batch tile selection: never larger than (rounded-up) B, always a multiple
    # of the 8-sublane granule; pad B so the grid divides evenly.
    tm_eff = min(tm, _round_up(B, 8))
    B_pad = _round_up(B, tm_eff)

    x = obs.astype(jnp.bfloat16)
    if B_pad != B:
        x = jnp.pad(x, ((0, B_pad - B), (0, 0)))

    # Pre-cast weights to bf16 (native MXU input dtype); biases stay f32 since
    # they are added post-matmul on the VPU in f32.
    w1 = params["w1"].astype(jnp.bfloat16); b1 = params["b1"]
    w2 = params["w2"].astype(jnp.bfloat16); b2 = params["b2"]
    w3 = params["w3"].astype(jnp.bfloat16); b3 = params["b3"]
    # Zero-pad the final layer to 128 output lanes -> unmasked vst on writeback.
    w4 = jnp.pad(params["w4"], ((0, 0), (0, dima_p - dima))).astype(jnp.bfloat16)
    b4 = jnp.pad(params["b4"], ((0, 0), (0, dima_p - dima)))

    grid = (B_pad // tm_eff,)

    def full(shape):
        # Whole-array block, constant index across the batch grid axis:
        # DMA'd once, stays VMEM-resident for all batch tiles.
        # NOTE: default 2-deep buffering duplicates ~160 KiB of bf16 weights in
        # VMEM; negligible here, so pipeline_mode=pl.Buffered(1) is not needed.
        return pl.BlockSpec(shape, lambda i: (0,) * len(shape))

    flops = 2 * B_pad * (din * H + H * H + H * H + H * dima_p)
    bytes_accessed = (
        int(x.size) * 2
        + (int(w1.size) + int(w2.size) + int(w3.size) + int(w4.size)) * 2
        + (int(b1.size) + int(b2.size) + int(b3.size) + int(b4.size)) * 4
        + B_pad * dima_p * 4
    )
    cost = pl.CostEstimate(flops=flops,
                           transcendentals=B_pad * dima_p,
                           bytes_accessed=bytes_accessed)

    out = pl.pallas_call(
        actor_kernel,
        out_shape=jax.ShapeDtypeStruct((B_pad, dima_p), jnp.float32),
        grid_spec=pltpu.PrefetchScalarGridSpec(
            num_scalar_prefetch=0,
            grid=grid,
            in_specs=[
                pl.BlockSpec((tm_eff, din), lambda i: (i, 0)),
                full(w1.shape), full(b1.shape),
                full(w2.shape), full(b2.shape),
                full(w3.shape), full(b3.shape),
                full(w4.shape), full(b4.shape),
            ],
            out_specs=pl.BlockSpec((tm_eff, dima_p), lambda i: (i, 0)),
        ),
        compiler_params=pltpu.CompilerParams(
            dimension_semantics=("parallel",),
        ),
        cost_estimate=cost,
    )(x, w1, b1, w2, b2, w3, b3, w4, b4)

    # Strip batch / lane padding.
    return out[:B, :dima]


def init_params(key, dimo, dimg, dima, hidden_dim=256):
    """Deterministic synthetic init matching nn.Linear shapes (weights stored transposed)."""
    din = dimo + dimg
    dims = [(din, hidden_dim), (hidden_dim, hidden_dim),
            (hidden_dim, hidden_dim), (hidden_dim, dima)]
    params = {}
    for idx, (fan_in, fan_out) in enumerate(dims, start=1):
        key, kw, kb = jax.random.split(key, 3)
        bound = 1.0 / (fan_in ** 0.5)  # PyTorch nn.Linear default uniform bound
        # stored as (in, out) == W.T relative to PyTorch's (out, in)
        params[f"w{idx}"] = jax.random.uniform(
            kw, (fan_in, fan_out), jnp.float32, -bound, bound)
        params[f"b{idx}"] = jax.random.uniform(
            kb, (1, fan_out), jnp.float32, -bound, bound)
    return params


def reference_forward(obs, params):
    # Pure f32 reference (matches the PyTorch module's semantics).
    h = obs
    for i in range(1, 4):
        h = jnp.maximum(h @ params[f"w{i}"] + params[f"b{i}"], 0.0)
    return jnp.tanh(h @ params["w4"] + params["b4"])


if __name__ == "__main__":
    key = jax.random.PRNGKey(0)
    dimo, dimg, dima, hidden_dim = 24, 8, 8, 256
    din = dimo + dimg

    key, kobs1, kobs2 = jax.random.split(key, 3)
    params = init_params(key, dimo, dimg, dima, hidden_dim)

    # Small-batch check (single grid step, batch padded up to the 8-sublane granule).
    B1 = 4
    obs1 = jax.random.normal(kobs1, (B1, din), jnp.float32)
    out1 = jax.block_until_ready(deterministic_actor_forward(obs1, params, tm=256))
    ref1 = reference_forward(obs1, params)
    assert out1.shape == (B1, dima)
    assert jnp.max(jnp.abs(out1 - ref1)) < 3e-2  # bf16 matmul inputs, f32 accumulate

    # Ragged multi-tile check (exercises grid > 1 and batch padding/slicing).
    B2 = 260
    obs2 = jax.random.normal(kobs2, (B2, din), jnp.float32)
    out2 = jax.block_until_ready(deterministic_actor_forward(obs2, params, tm=128))
    ref2 = reference_forward(obs2, params)
    assert out2.shape == (B2, dima)
    assert jnp.max(jnp.abs(out2 - ref2)) < 3e-2

    print("KERNEL_OK")
</pallas_src>

<mosaic_0001>
module attributes {stable_mosaic.version = 11 : i64} {
  func.func @actor_kernel(%arg0: i32, %arg1: memref<8x32xbf16, #tpu.memory_space<vmem>>, %arg2: memref<32x256xbf16, #tpu.memory_space<vmem>>, %arg3: memref<1x256xf32, #tpu.memory_space<vmem>>, %arg4: memref<256x256xbf16, #tpu.memory_space<vmem>>, %arg5: memref<1x256xf32, #tpu.memory_space<vmem>>, %arg6: memref<256x256xbf16, #tpu.memory_space<vmem>>, %arg7: memref<1x256xf32, #tpu.memory_space<vmem>>, %arg8: memref<256x128xbf16, #tpu.memory_space<vmem>>, %arg9: memref<1x128xf32, #tpu.memory_space<vmem>>, %arg10: memref<8x128xf32, #tpu.memory_space<vmem>>) attributes {dimension_semantics = [#tpu.dimension_semantics<parallel>], iteration_bounds = array<i64: 1>, scalar_prefetch = 0 : i64, scratch_operands = 0 : i64, tpu.core_type = #tpu.core_type<tc>, window_params = [{transform_indices = @transform_0, window_bounds = array<i64: 8, 32>}, {pipeline_mode = #tpu.pipeline_mode<synchronous>, transform_indices = @transform_1, window_bounds = array<i64: 32, 256>}, {pipeline_mode = #tpu.pipeline_mode<synchronous>, transform_indices = @transform_2, window_bounds = array<i64: 1, 256>}, {pipeline_mode = #tpu.pipeline_mode<synchronous>, transform_indices = @transform_3, window_bounds = array<i64: 256, 256>}, {pipeline_mode = #tpu.pipeline_mode<synchronous>, transform_indices = @transform_4, window_bounds = array<i64: 1, 256>}, {pipeline_mode = #tpu.pipeline_mode<synchronous>, transform_indices = @transform_5, window_bounds = array<i64: 256, 256>}, {pipeline_mode = #tpu.pipeline_mode<synchronous>, transform_indices = @transform_6, window_bounds = array<i64: 1, 256>}, {pipeline_mode = #tpu.pipeline_mode<synchronous>, transform_indices = @transform_7, window_bounds = array<i64: 256, 128>}, {pipeline_mode = #tpu.pipeline_mode<synchronous>, transform_indices = @transform_8, window_bounds = array<i64: 1, 128>}, {transform_indices = @transform_9, window_bounds = array<i64: 8, 128>}]} {
    %c0 = arith.constant 0 : index
    %c0_0 = arith.constant 0 : index
    %0 = vector.load %arg1[%c0, %c0_0] : memref<8x32xbf16, #tpu.memory_space<vmem>>, vector<8x32xbf16>
    %c0_1 = arith.constant 0 : index
    %c0_2 = arith.constant 0 : index
    %1 = vector.load %arg2[%c0_1, %c0_2] : memref<32x256xbf16, #tpu.memory_space<vmem>>, vector<32x256xbf16>
    %cst = arith.constant dense<0.000000e+00> : vector<8x256xf32>
    %2 = tpu.matmul %0, %1, %cst {dimension_numbers = #tpu.dot_dimension_numbers<[1], [0], [0], [1], [0, 0, 1, 1], [], []>} : vector<8x32xbf16>, vector<32x256xbf16>, vector<8x256xf32> -> vector<8x256xf32>
    %c0_3 = arith.constant 0 : index
    %c0_4 = arith.constant 0 : index
    %3 = vector.load %arg3[%c0_3, %c0_4] : memref<1x256xf32, #tpu.memory_space<vmem>>, vector<1x256xf32>
    %4 = vector.broadcast %3 : vector<1x256xf32> to vector<8x256xf32>
    %5 = arith.addf %2, %4 : vector<8x256xf32>
    %cst_5 = arith.constant 0.000000e+00 : f32
    %6 = vector.broadcast %cst_5 : f32 to vector<8x256xf32>
    %7 = arith.maximumf %5, %6 : vector<8x256xf32>
    %8 = arith.truncf %7 : vector<8x256xf32> to vector<8x256xbf16>
    %c0_6 = arith.constant 0 : index
    %c0_7 = arith.constant 0 : index
    %9 = vector.load %arg4[%c0_6, %c0_7] : memref<256x256xbf16, #tpu.memory_space<vmem>>, vector<256x256xbf16>
    %cst_8 = arith.constant dense<0.000000e+00> : vector<8x256xf32>
    %10 = tpu.matmul %8, %9, %cst_8 {dimension_numbers = #tpu.dot_dimension_numbers<[1], [0], [0], [1], [0, 0, 1, 1], [], []>} : vector<8x256xbf16>, vector<256x256xbf16>, vector<8x256xf32> -> vector<8x256xf32>
    %c0_9 = arith.constant 0 : index
    %c0_10 = arith.constant 0 : index
    %11 = vector.load %arg5[%c0_9, %c0_10] : memref<1x256xf32, #tpu.memory_space<vmem>>, vector<1x256xf32>
    %12 = vector.broadcast %11 : vector<1x256xf32> to vector<8x256xf32>
    %13 = arith.addf %10, %12 : vector<8x256xf32>
    %cst_11 = arith.constant 0.000000e+00 : f32
    %14 = vector.broadcast %cst_11 : f32 to vector<8x256xf32>
    %15 = arith.maximumf %13, %14 : vector<8x256xf32>
    %16 = arith.truncf %15 : vector<8x256xf32> to vector<8x256xbf16>
    %c0_12 = arith.constant 0 : index
    %c0_13 = arith.constant 0 : index
    %17 = vector.load %arg6[%c0_12, %c0_13] : memref<256x256xbf16, #tpu.memory_space<vmem>>, vector<256x256xbf16>
    %cst_14 = arith.constant dense<0.000000e+00> : vector<8x256xf32>
    %18 = tpu.matmul %16, %17, %cst_14 {dimension_numbers = #tpu.dot_dimension_numbers<[1], [0], [0], [1], [0, 0, 1, 1], [], []>} : vector<8x256xbf16>, vector<256x256xbf16>, vector<8x256xf32> -> vector<8x256xf32>
    %c0_15 = arith.constant 0 : index
    %c0_16 = arith.constant 0 : index
    %19 = vector.load %arg7[%c0_15, %c0_16] : memref<1x256xf32, #tpu.memory_space<vmem>>, vector<1x256xf32>
    %20 = vector.broadcast %19 : vector<1x256xf32> to vector<8x256xf32>
    %21 = arith.addf %18, %20 : vector<8x256xf32>
    %cst_17 = arith.constant 0.000000e+00 : f32
    %22 = vector.broadcast %cst_17 : f32 to vector<8x256xf32>
    %23 = arith.maximumf %21, %22 : vector<8x256xf32>
    %24 = arith.truncf %23 : vector<8x256xf32> to vector<8x256xbf16>
    %c0_18 = arith.constant 0 : index
    %c0_19 = arith.constant 0 : index
    %25 = vector.load %arg8[%c0_18, %c0_19] : memref<256x128xbf16, #tpu.memory_space<vmem>>, vector<256x128xbf16>
    %cst_20 = arith.constant dense<0.000000e+00> : vector<8x128xf32>
    %26 = tpu.matmul %24, %25, %cst_20 {dimension_numbers = #tpu.dot_dimension_numbers<[1], [0], [0], [1], [0, 0, 1, 1], [], []>} : vector<8x256xbf16>, vector<256x128xbf16>, vector<8x128xf32> -> vector<8x128xf32>
    %c0_21 = arith.constant 0 : index
    %c0_22 = arith.constant 0 : index
    %27 = vector.load %arg9[%c0_21, %c0_22] : memref<1x128xf32, #tpu.memory_space<vmem>>, vector<1x128xf32>
    %28 = vector.broadcast %27 : vector<1x128xf32> to vector<8x128xf32>
    %29 = arith.addf %26, %28 : vector<8x128xf32>
    %30 = math.tanh %29 : vector<8x128xf32>
    %c0_23 = arith.constant 0 : index
    %c0_24 = arith.constant 0 : index
    %31 = vector.load %arg10[%c0_23, %c0_24] : memref<8x128xf32, #tpu.memory_space<vmem>>, vector<8x128xf32>
    tpu.vector_store %arg10[%c0_23, %c0_24], %30 {strides = array<i32>} : memref<8x128xf32, #tpu.memory_space<vmem>>, vector<8x128xf32>,
    return
  }
  func.func @transform_0(%arg0: i32) -> (i32, i32) {
    %c0_i32 = arith.constant 0 : i32
    %c0_i32_0 = arith.constant 0 : i32
    return %arg0, %c0_i32 : i32, i32
  }
  func.func @transform_1(%arg0: i32) -> (i32, i32) {
    %c0_i32 = arith.constant 0 : i32
    %c0_i32_0 = arith.constant 0 : i32
    %c0_i32_1 = arith.constant 0 : i32
    return %c0_i32, %c0_i32_0 : i32, i32
  }
  func.func @transform_2(%arg0: i32) -> (i32, i32) {
    %c0_i32 = arith.constant 0 : i32
    %c0_i32_0 = arith.constant 0 : i32
    %c0_i32_1 = arith.constant 0 : i32
    return %c0_i32, %c0_i32_0 : i32, i32
  }
  func.func @transform_3(%arg0: i32) -> (i32, i32) {
    %c0_i32 = arith.constant 0 : i32
    %c0_i32_0 = arith.constant 0 : i32
    %c0_i32_1 = arith.constant 0 : i32
    return %c0_i32, %c0_i32_0 : i32, i32
  }
  func.func @transform_4(%arg0: i32) -> (i32, i32) {
    %c0_i32 = arith.constant 0 : i32
    %c0_i32_0 = arith.constant 0 : i32
    %c0_i32_1 = arith.constant 0 : i32
    return %c0_i32, %c0_i32_0 : i32, i32
  }
  func.func @transform_5(%arg0: i32) -> (i32, i32) {
    %c0_i32 = arith.constant 0 : i32
    %c0_i32_0 = arith.constant 0 : i32
    %c0_i32_1 = arith.constant 0 : i32
    return %c0_i32, %c0_i32_0 : i32, i32
  }
  func.func @transform_6(%arg0: i32) -> (i32, i32) {
    %c0_i32 = arith.constant 0 : i32
    %c0_i32_0 = arith.constant 0 : i32
    %c0_i32_1 = arith.constant 0 : i32
    return %c0_i32, %c0_i32_0 : i32, i32
  }
  func.func @transform_7(%arg0: i32) -> (i32, i32) {
    %c0_i32 = arith.constant 0 : i32
    %c0_i32_0 = arith.constant 0 : i32
    %c0_i32_1 = arith.constant 0 : i32
    return %c0_i32, %c0_i32_0 : i32, i32
  }
  func.func @transform_8(%arg0: i32) -> (i32, i32) {
    %c0_i32 = arith.constant 0 : i32
    %c0_i32_0 = arith.constant 0 : i32
    %c0_i32_1 = arith.constant 0 : i32
    return %c0_i32, %c0_i32_0 : i32, i32
  }
  func.func @transform_9(%arg0: i32) -> (i32, i32) {
    %c0_i32 = arith.constant 0 : i32
    %c0_i32_0 = arith.constant 0 : i32
    return %arg0, %c0_i32 : i32, i32
  }
}

</mosaic_0001>

<bundles_post_ra>
// kernel: tpu_custom_call.1
= control target key start
LH: loop header
LB: loop body
LE: loop exit
PB: predicated region body
PF: predicated region fallthrough
CT: control target
= control target key end

     0   :  { %14 = vsyncpa [#allocation3], 0  ;;  %s1421_s0 = inlined_call_operand.hbm [shape: bf16[8,32], index: 0, kind: input, shape index: {}]   ;;  %s1422_s1 = inlined_call_operand.hbm [shape: bf16[32,256], index: 1, kind: input, shape index: {}]   ;;  %s1423_s2 = inlined_call_operand.vmem [shape: f32[1,256], index: 2, kind: input, shape index: {}]   ;;  %s1424_s3 = inlined_call_operand.hbm [shape: bf16[256,256], index: 3, kind: input, shape index: {}]   ;;  %s1425_s4 = inlined_call_operand.vmem [shape: f32[1,256], index: 4, kind: input, shape index: {}]   ;;  %s1426_s5 = inlined_call_operand.hbm [shape: bf16[256,256], index: 5, kind: input, shape index: {}]   ;;  %s1427_s6 = inlined_call_operand.vmem [shape: f32[1,256], index: 6, kind: input, shape index: {}]   ;;  %s1428_s7 = inlined_call_operand.hbm [shape: bf16[256,128], index: 7, kind: input, shape index: {}]   ;;  %s1429_s8 = inlined_call_operand.vmem [shape: f32[1,128], index: 8, kind: input, shape index: {}]   ;;  %s1430_s9 = inlined_call_operand.hbm [shape: f32[8,128], index: 9, kind: output, shape index: {}]  }
   0x1   :  { %15 = vsyncpa [#allocation6], 0 }
   0x2   :  { %16 = vsyncpa [#allocation9], 0 }
   0x3   :  { %17 = vsyncpa [#allocation4], 0  ;;  %s1257_s30 = smov [#allocation5]   ;;  %s1117_s13 = scalar_lea.hbm %s1422_s1, 512 }
   0x4   :  { %s33_s10 = sshll.u32 %s1257_s30, 4  ;;  %p1118_p0 = scmp.ne.s32.totalorder %s1422_s1, %s1117_s13  ;;  %s34_s10 = int_to_ptr.vmem [resolvable:$true] %s33_s10 }
   0x5   :  { %p1121_p1 = scmp.lt.u32.totalorder %s1117_s13, %s1422_s1 }
   0x7   :  { %p1123_p2 = pnand %p1121_p1, %p1118_p0 }
   0x9   :  { %1126 = shalt.err (!%p1123_p2)
}
   0xa   :  { %s1127_s18 = scalar_lea.vmem %s34_s10, 512  ;;  %p1132_p4 = scmp.lt.s32.totalorder %s34_s10, %s34_s10 }
   0xb   :  { %p1128_p3 = scmp.ne.s32.totalorder %s34_s10, %s1127_s18  ;;  %p1133_p5 = scmp.lt.s32.totalorder %s1127_s18, %s1127_s18 }
   0xd   :  { %p1134_p6 = por %p1133_p5, %p1132_p4 }
   0xf   :  { %p1135_p7 = pnand %p1134_p6, %p1128_p3 }
  0x11   :  { %1138 = shalt.err (!%p1135_p7)
}
  0x12   :  { %s1258_s19 = smov 128   ;;  %s1259_s20 = smov 8  }
  0x13   :  { %39 = dma.hbm_to_vmem [thread:$0]  %s1422_s1, 512, %s34_s10, [#allocation6], %s1258_s19, %s1258_s19, %s1259_s20  }
  0x14   :  { %s1260_s23 = smov [#allocation8]   ;;  %s1261_s25 = smov [#allocation2]  }
  0x15   :  { %s61_s24 = sshll.u32 %s1260_s23, 4  ;;  %s24_s26 = sshll.u32 %s1261_s25, 4  ;;  %s62_s24 = int_to_ptr.vmem [resolvable:$true] %s61_s24  ;;  %s25_s26 = int_to_ptr.vmem [resolvable:$true] %s24_s26 }
  0x16   :  { %s1139_s29 = scalar_lea.hbm %s1426_s5, 4096 }
  0x17   :  { %p1140_p8 = scmp.ne.s32.totalorder %s1426_s5, %s1139_s29  ;;  %p1143_p9 = scmp.lt.u32.totalorder %s1139_s29, %s1426_s5 }
  0x19   :  { %p1145_p10 = pnand %p1143_p9, %p1140_p8 }
  0x1b   :  { %1148 = shalt.err (!%p1145_p10)
}
  0x1c   :  { %s1149_s1 = scalar_lea.vmem %s62_s24, 4096  ;;  %p1154_p12 = scmp.lt.s32.totalorder %s62_s24, %s62_s24 }
  0x1d   :  { %p1150_p11 = scmp.ne.s32.totalorder %s62_s24, %s1149_s1  ;;  %p1155_p13 = scmp.lt.s32.totalorder %s1149_s1, %s1149_s1 }
  0x1f   :  { %p1156_p0 = por %p1155_p13, %p1154_p12 }
  0x21   :  { %p1157_p1 = pnand %p1156_p0, %p1150_p11 }
  0x23   :  { %1160 = shalt.err (!%p1157_p1)
}
  0x24   :  { %67 = dma.hbm_to_vmem [thread:$0]  %s1426_s5, 4096, %s62_s24, [#allocation9], %s1258_s19, %s1258_s19, %s1259_s20  }
  0x25   :  { %s1161_s17 = scalar_lea.hbm %s1421_s0, 64 }
  0x26   :  { %p1162_p2 = scmp.ne.s32.totalorder %s1421_s0, %s1161_s17  ;;  %p1165_p3 = scmp.lt.u32.totalorder %s1161_s17, %s1421_s0 }
  0x28   :  { %p1167_p4 = pnand %p1165_p3, %p1162_p2 }
  0x2a   :  { %1170 = shalt.err (!%p1167_p4)
}
  0x2b   :  { %s1171_s25 = scalar_lea.vmem %s25_s26, 64  ;;  %p1176_p6 = scmp.lt.s32.totalorder %s25_s26, %s25_s26 }
  0x2c   :  { %p1172_p5 = scmp.ne.s32.totalorder %s25_s26, %s1171_s25  ;;  %p1177_p7 = scmp.lt.s32.totalorder %s1171_s25, %s1171_s25 }
  0x2e   :  { %p1178_p8 = por %p1177_p7, %p1176_p6 }
  0x30   :  { %p1179_p9 = pnand %p1178_p8, %p1172_p5 }
  0x32   :  { %1182 = shalt.err (!%p1179_p9)
}
  0x33   :  { %27 = dma.hbm_to_vmem [thread:$0]  %s1421_s0, 64, %s25_s26, [#allocation3]  }
  0x34   :  { %s1262_s27 = smov [#allocation7]   ;;  %s1263_s29 = smov [#allocation10]  }
  0x35   :  { %s47_s28 = sshll.u32 %s1262_s27, 4  ;;  %s75_s30 = sshll.u32 %s1263_s29, 4  ;;  %s48_s28 = int_to_ptr.vmem [resolvable:$true] %s47_s28  ;;  %s76_s30 = int_to_ptr.vmem [resolvable:$true] %s75_s30 }
  0x36   :  { %s1183_s13 = scalar_lea.hbm %s1424_s3, 4096 }
  0x37   :  { %p1184_p10 = scmp.ne.s32.totalorder %s1424_s3, %s1183_s13  ;;  %p1187_p11 = scmp.lt.u32.totalorder %s1183_s13, %s1424_s3 }
  0x39   :  { %p1189_p12 = pnand %p1187_p11, %p1184_p10 }
  0x3b   :  { %1192 = shalt.err (!%p1189_p12)
}
  0x3c   :  { %s1193_s0 = scalar_lea.vmem %s48_s28, 4096  ;;  %p1198_p0 = scmp.lt.s32.totalorder %s48_s28, %s48_s28 }
  0x3d   :  { %p1194_p13 = scmp.ne.s32.totalorder %s48_s28, %s1193_s0  ;;  %p1199_p1 = scmp.lt.s32.totalorder %s1193_s0, %s1193_s0 }
  0x3f   :  { %p1200_p2 = por %p1199_p1, %p1198_p0 }
  0x41   :  { %p1201_p3 = pnand %p1200_p2, %p1194_p13 }
  0x43   :  { %1204 = shalt.err (!%p1201_p3)
}
  0x44   :  { %53 = dma.hbm_to_vmem [thread:$0]  %s1424_s3, 4096, %s48_s28, [#allocation6], %s1258_s19, %s1258_s19, %s1259_s20  }
  0x45   :  { %s1205_s21 = scalar_lea.hbm %s1428_s7, 2048 }
  0x46   :  { %p1206_p4 = scmp.ne.s32.totalorder %s1428_s7, %s1205_s21  ;;  %p1209_p5 = scmp.lt.u32.totalorder %s1205_s21, %s1428_s7 }
  0x48   :  { %p1211_p6 = pnand %p1209_p5, %p1206_p4 }
  0x4a   :  { %1214 = shalt.err (!%p1211_p6)
}
  0x4b   :  { %s1215_s24 = scalar_lea.vmem %s76_s30, 2048  ;;  %p1220_p8 = scmp.lt.s32.totalorder %s76_s30, %s76_s30 }
  0x4c   :  { %p1216_p7 = scmp.ne.s32.totalorder %s76_s30, %s1215_s24  ;;  %p1221_p9 = scmp.lt.s32.totalorder %s1215_s24, %s1215_s24 }
  0x4e   :  { %p1222_p10 = por %p1221_p9, %p1220_p8 }
  0x50   :  { %p1223_p11 = pnand %p1222_p10, %p1216_p7 }
  0x52   :  { %1226 = shalt.err (!%p1223_p11)
}
  0x53   :  { %s1264_s3 = smov 64   ;;  %s1265_s19 = smov 4  }
  0x54   :  { %81 = dma.hbm_to_vmem [thread:$0]  %s1428_s7, 2048, %s76_s30, [#allocation9], %s1264_s3, %s1264_s3, %s1265_s19  }
  0x55   :  { %1249 = dma.done.wait [#allocation3], 64  }
  0x56   :  { %1250 = vsyncadd [#allocation3], 4294967232 }
  0x57   :  { %1251 = dma.done.wait [#allocation6], 4608  }
  0x58   :  { %1252 = vsyncadd [#allocation6], 4294962688 }
  0x59   :  { %1253 = dma.done.wait [#allocation9], 6144  }
  0x5a   :  { %1254 = vsyncadd [#allocation9], 4294961152  ;;  %v1266_v0 = vmov 0   ;;  %v997_v1 = vld [vmem:[#allocation5 + $0x4] ss:$8 sps:$4 sm:$0xff]   ;;  %vm137_vm0 = vcmask 261120  }
  0x5b   :  { %173 = vmatprep.mubr.bf16.mxu0 %v1266_v0  ;;  %v999_v2 = vld [vmem:[#allocation5] ss:$8 sps:$4 sm:$0xff]   ;;  %141 = vmatprep.subr.bf16.mxu0 %v997_v1  ;;  %v1000_v3 = vld [vmem:[#allocation5 + $0x14] ss:$8 sps:$4 sm:$0xff]   ;;  %v1002_v4 = vld [vmem:[#allocation5 + $0x10] ss:$8 sps:$4 sm:$0xff]  }
  0x5c   :  { %142 = vmatpush1.bf16.msra.mxu0 %v999_v2  ;;  %v1003_v5 = vld [vmem:[#allocation7 + $0x4] ss:$8 sps:$4 sm:$0xff]   ;;  %v1005_v6 = vld [vmem:[#allocation7] ss:$8 sps:$4 sm:$0xff]   ;;  %v1006_v7 = vld [vmem:[#allocation7 + $0x14] ss:$8 sps:$4 sm:$0xff]   ;;  %v107_v2 = vlaneseq }
  0x5d   :  { %143 = vmatprep.subr.bf16.mxu0 %v1000_v3  ;;  %390 = vmatprep.subr.bf16.mxu1 %v1003_v5  ;;  %v100_v8 = vld [vmem:[#allocation2] sm:$0xf]  ;;  %v1008_v9 = vld [vmem:[#allocation7 + $0x10] ss:$8 sps:$4 sm:$0xff]   ;;  %v1009_v10 = vld [vmem:[#allocation7 + $0x24] ss:$8 sps:$4 sm:$0xff]  }
  0x5e   :  { %391 = vmatpush1.bf16.msra.mxu1 %v1005_v6  ;;  %v1011_v11 = vld [vmem:[#allocation7 + $0x20] ss:$8 sps:$4 sm:$0xff]   ;;  %v1012_v12 = vld [vmem:[#allocation7 + $0x34] ss:$8 sps:$4 sm:$0xff]   ;;  %v1014_v13 = vld [vmem:[#allocation7 + $0x30] ss:$8 sps:$4 sm:$0xff]  }
  0x5f   :  { %392 = vmatprep.subr.bf16.mxu1 %v1006_v7  ;;  %v1015_v14 = vld [vmem:[#allocation7 + $0x44] ss:$8 sps:$4 sm:$0xff]   ;;  %v1017_v15 = vld [vmem:[#allocation7 + $0x40] ss:$8 sps:$4 sm:$0xff]   ;;  %v1018_v16 = vld [vmem:[#allocation7 + $0x54] ss:$8 sps:$4 sm:$0xff]  }
  0x60   :  { %144 = vmatpush1.bf16.msra.mxu0 %v1002_v4  ;;  %v1020_v17 = vld [vmem:[#allocation7 + $0x50] ss:$8 sps:$4 sm:$0xff]   ;;  %v1021_v18 = vld [vmem:[#allocation7 + $0x64] ss:$8 sps:$4 sm:$0xff]   ;;  %v1023_v19 = vld [vmem:[#allocation7 + $0x60] ss:$8 sps:$4 sm:$0xff]  }
  0x61   :  { %v1024_v20 = vld [vmem:[#allocation7 + $0x74] ss:$8 sps:$4 sm:$0xff]   ;;  %v1026_v21 = vld [vmem:[#allocation7 + $0x70] ss:$8 sps:$4 sm:$0xff]   ;;  %v1027_v22 = vld [vmem:[#allocation7 + $0x84] ss:$8 sps:$4 sm:$0xff]  }
  0x62   :  { %393 = vmatpush1.bf16.msra.mxu1 %v1008_v9  ;;  %v1029_v23 = vld [vmem:[#allocation7 + $0x80] ss:$8 sps:$4 sm:$0xff]   ;;  %v1030_v24 = vld [vmem:[#allocation7 + $0x94] ss:$8 sps:$4 sm:$0xff]   ;;  %v1032_v25 = vld [vmem:[#allocation7 + $0x90] ss:$8 sps:$4 sm:$0xff]  }
  0x63   :  { %882 = vmatmul.mubr.msk.bf16.vlgmr.msra.gmra.mrb[0].mxu0 %vm137_vm0, %v100_v8  ;;  %394 = vmatprep.subr.bf16.mxu1 %v1009_v10  ;;  %v1033_v26 = vld [vmem:[#allocation7 + $0xa4] ss:$8 sps:$4 sm:$0xff]   ;;  %v1035_v27 = vld [vmem:[#allocation7 + $0xa0] ss:$8 sps:$4 sm:$0xff]   ;;  %v1036_v28 = vld [vmem:[#allocation7 + $0xb4] ss:$8 sps:$4 sm:$0xff]  }
  0x64   :  { %v1038_v29 = vld [vmem:[#allocation7 + $0xb0] ss:$8 sps:$4 sm:$0xff]   ;;  %v1039_v30 = vld [vmem:[#allocation7 + $0xc4] ss:$8 sps:$4 sm:$0xff]   ;;  %v1041_v31 = vld [vmem:[#allocation7 + $0xc0] ss:$8 sps:$4 sm:$0xff]  }
  0x65   :  { %v1042_v32 = vld [vmem:[#allocation7 + $0xd4] ss:$8 sps:$4 sm:$0xff]   ;;  %v1044_v33 = vld [vmem:[#allocation7 + $0xd0] ss:$8 sps:$4 sm:$0xff]   ;;  %v1045_v34 = vld [vmem:[#allocation7 + $0xe4] ss:$8 sps:$4 sm:$0xff]  }
  0x66   :  { %395 = vmatpush1.bf16.msra.mxu1 %v1011_v11  ;;  %v1047_v35 = vld [vmem:[#allocation7 + $0xe0] ss:$8 sps:$4 sm:$0xff]   ;;  %v1048_v36 = vld [vmem:[#allocation7 + $0xf4] ss:$8 sps:$4 sm:$0xff]   ;;  %v1050_v37 = vld [vmem:[#allocation7 + $0xf0] ss:$8 sps:$4 sm:$0xff]  }
  0x67   :  { %396 = vmatprep.subr.bf16.mxu1 %v1012_v12  ;;  %v1051_v38 = vld [vmem:[#allocation8] ss:$8 sps:$4 sm:$0xff]   ;;  %v1053_v39 = vld [vmem:[#allocation8 + $0x4] ss:$8 sps:$4 sm:$0xff]   ;;  %v1056_v40 = vld [vmem:[#allocation8 + $0x14] ss:$8 sps:$4 sm:$0xff]  }
  0x68   :  { %639 = vmatprep.subr.bf16.mxu0 %v1053_v39  ;;  %v1054_v41 = vld [vmem:[#allocation8 + $0x10] ss:$8 sps:$4 sm:$0xff]   ;;  %v1059_v42 = vld [vmem:[#allocation8 + $0x24] ss:$8 sps:$4 sm:$0xff]   ;;  %v1057_v43 = vld [vmem:[#allocation8 + $0x20] ss:$8 sps:$4 sm:$0xff]  }
  0x69   :  { %640 = vmatpush1.bf16.msra.mxu0 %v1051_v38  ;;  %v1062_v44 = vld [vmem:[#allocation8 + $0x34] ss:$8 sps:$4 sm:$0xff]   ;;  %v1060_v45 = vld [vmem:[#allocation8 + $0x30] ss:$8 sps:$4 sm:$0xff]   ;;  %v1065_v46 = vld [vmem:[#allocation8 + $0x44] ss:$8 sps:$4 sm:$0xff]  }
  0x6a   :  { %397 = vmatpush1.bf16.msra.mxu1 %v1014_v13  ;;  %641 = vmatprep.subr.bf16.mxu0 %v1056_v40  ;;  %v1063_v47 = vld [vmem:[#allocation8 + $0x40] ss:$8 sps:$4 sm:$0xff]   ;;  %v1068_v48 = vld [vmem:[#allocation8 + $0x54] ss:$8 sps:$4 sm:$0xff]   ;;  %v1066_v49 = vld [vmem:[#allocation8 + $0x50] ss:$8 sps:$4 sm:$0xff]  }
  0x6b   :  { %398 = vmatprep.subr.bf16.mxu1 %v1015_v14  ;;  %v1071_v50 = vld [vmem:[#allocation8 + $0x64] ss:$8 sps:$4 sm:$0xff]   ;;  %v1069_v51 = vld [vmem:[#allocation8 + $0x60] ss:$8 sps:$4 sm:$0xff]   ;;  %v1074_v52 = vld [vmem:[#allocation8 + $0x74] ss:$8 sps:$4 sm:$0xff]  }
  0x6c   :  { %v1072_v53 = vld [vmem:[#allocation8 + $0x70] ss:$8 sps:$4 sm:$0xff]   ;;  %v1077_v54 = vld [vmem:[#allocation8 + $0x84] ss:$8 sps:$4 sm:$0xff]   ;;  %v1075_v55 = vld [vmem:[#allocation8 + $0x80] ss:$8 sps:$4 sm:$0xff]  }
  0x6d   :  { %642 = vmatpush1.bf16.msra.mxu0 %v1054_v41  ;;  %v1080_v56 = vld [vmem:[#allocation8 + $0x94] ss:$8 sps:$4 sm:$0xff]   ;;  %v1078_v57 = vld [vmem:[#allocation8 + $0x90] ss:$8 sps:$4 sm:$0xff]   ;;  %v1083_v58 = vld [vmem:[#allocation8 + $0xa4] ss:$8 sps:$4 sm:$0xff]  }
  0x6e   :  { %399 = vmatpush1.bf16.msra.mxu1 %v1017_v15  ;;  %643 = vmatprep.subr.bf16.mxu0 %v1059_v42  ;;  %v1081_v59 = vld [vmem:[#allocation8 + $0xa0] ss:$8 sps:$4 sm:$0xff]   ;;  %v1086_v60 = vld [vmem:[#allocation8 + $0xb4] ss:$8 sps:$4 sm:$0xff]   ;;  %v1084_v61 = vld [vmem:[#allocation8 + $0xb0] ss:$8 sps:$4 sm:$0xff]  }
  0x6f   :  { %400 = vmatprep.subr.bf16.mxu1 %v1018_v16  ;;  %v1089_v62 = vld [vmem:[#allocation8 + $0xc4] ss:$8 sps:$4 sm:$0xff]   ;;  %v1087_v63 = vld [vmem:[#allocation8 + $0xc0] ss:$8 sps:$4 sm:$0xff]   ;;  %v1092_v0 = vld [vmem:[#allocation8 + $0xd4] ss:$8 sps:$4 sm:$0xff]  }
  0x70   :  { %v1090_v1 = vld [vmem:[#allocation8 + $0xd0] ss:$8 sps:$4 sm:$0xff]   ;;  %v108_v3 = vshrl.u32 %v107_v2, 7  ;;  %v105_v5 = vld [vmem:[%s1423_s2] sm:$0x3] }
  0x71   :  { %644 = vmatpush1.bf16.msra.mxu0 %v1057_v43  ;;  %v947_v2 = vld [vmem:[%s1429_s8] ss:$0 sm:$0xff] }
  0x72   :  { %401 = vmatpush1.bf16.msra.mxu1 %v1020_v17  ;;  %645 = vmatprep.subr.bf16.mxu0 %v1062_v44  ;;  %v1387_v4 = vsub.s32 0, %v108_v3  ;;  %v1392_v6 = vsub.s32 1, %v108_v3 }
  0x73   :  { %402 = vmatprep.subr.bf16.mxu1 %v1021_v18 }
  0x74   :  { %v110_v7 = vrot.slane %v105_v5, %v1387_v4  ;;  %v114_v8 = vrot.slane %v105_v5, %v1392_v6 }
  0x75   :  { %646 = vmatpush1.bf16.msra.mxu0 %v1060_v45 }
  0x76   :  { %403 = vmatpush1.bf16.msra.mxu1 %v1023_v19  ;;  %647 = vmatprep.subr.bf16.mxu0 %v1065_v46  ;;  %v1095_v19 = vld [vmem:[#allocation8 + $0xe4] ss:$8 sps:$4 sm:$0xff]  }
  0x77   :  { %404 = vmatprep.subr.bf16.mxu1 %v1024_v20  ;;  %v1093_v20 = vld [vmem:[#allocation8 + $0xe0] ss:$8 sps:$4 sm:$0xff]  }
  0x79   :  { %648 = vmatpush1.bf16.msra.mxu0 %v1063_v47 }
  0x7a   :  { %405 = vmatpush1.bf16.msra.mxu1 %v1026_v21  ;;  %649 = vmatprep.subr.bf16.mxu0 %v1068_v48  ;;  %v1098_v21 = vld [vmem:[#allocation8 + $0xf4] ss:$8 sps:$4 sm:$0xff]  }
  0x7b   :  { %406 = vmatprep.subr.bf16.mxu1 %v1027_v22  ;;  %v1096_v22 = vld [vmem:[#allocation8 + $0xf0] ss:$8 sps:$4 sm:$0xff]  }
  0x7c   :  { %v1111_v48 = vld [vmem:[#allocation10 + $0x70] sm:$0xff]  }
  0x7d   :  { %650 = vmatpush1.bf16.msra.mxu0 %v1066_v49  ;;  %v1112_v49 = vld [vmem:[#allocation10 + $0x30] sm:$0xff]  }
  0x7e   :  { %407 = vmatpush1.bf16.msra.mxu1 %v1029_v23  ;;  %651 = vmatprep.subr.bf16.mxu0 %v1071_v50  ;;  %v1099_v23 = vld [vmem:[#allocation10 + $0x40] sm:$0xff]   ;;  %v1113_v50 = vld [vmem:[#allocation10 + $0x78] sm:$0xff]  }
  0x7f   :  { %408 = vmatprep.subr.bf16.mxu1 %v1030_v24  ;;  %v1100_v24 = vld [vmem:[#allocation10] sm:$0xff]  }
  0x81   :  { %652 = vmatpush1.bf16.msra.mxu0 %v1069_v51  ;;  %v1114_v51 = vld [vmem:[#allocation10 + $0x38] sm:$0xff]  }
  0x82   :  { %409 = vmatpush1.bf16.msra.mxu1 %v1032_v25  ;;  %653 = vmatprep.subr.bf16.mxu0 %v1074_v52  ;;  %v1101_v25 = vld [vmem:[#allocation10 + $0x48] sm:$0xff]   ;;  %v467_v52 = vld [vmem:[%s1427_s6] sm:$0x3]  ;;  %s1267_s6 = smov [#allocation11]  }
  0x83   :  { %410 = vmatprep.subr.bf16.mxu1 %v1033_v26  ;;  %v1102_v26 = vld [vmem:[#allocation10 + $0x8] sm:$0xff]   ;;  %s867_s13 = sshll.u32 %s1267_s6, 4  ;;  %s868_s13 = int_to_ptr.vmem [resolvable:$true] %s867_s13 }
  0x84   :  { %s1227_s1 = scalar_lea.vmem %s868_s13, 128  ;;  %p1232_p13 = scmp.lt.s32.totalorder %s868_s13, %s868_s13 }
  0x85   :  { %654 = vmatpush1.bf16.msra.mxu0 %v1072_v53  ;;  %v472_v53 = vrot.slane %v467_v52, %v1387_v4  ;;  %p1228_p12 = scmp.ne.s32.totalorder %s868_s13, %s1227_s1  ;;  %p1233_p0 = scmp.lt.s32.totalorder %s1227_s1, %s1227_s1 }
  0x86   :  { %411 = vmatpush1.bf16.msra.mxu1 %v1035_v27  ;;  %655 = vmatprep.subr.bf16.mxu0 %v1077_v54  ;;  %v1103_v27 = vld [vmem:[#allocation10 + $0x50] sm:$0xff]   ;;  %v476_v54 = vrot.slane %v467_v52, %v1392_v6 }
  0x87   :  { %412 = vmatprep.subr.bf16.mxu1 %v1036_v28  ;;  %v1104_v28 = vld [vmem:[#allocation10 + $0x10] sm:$0xff]   ;;  %p1234_p1 = por %p1233_p0, %p1232_p13 }
  0x89   :  { %656 = vmatpush1.bf16.msra.mxu0 %v1075_v55  ;;  %p1235_p2 = pnand %p1234_p1, %p1228_p12 }
  0x8a   :  { %413 = vmatpush1.bf16.msra.mxu1 %v1038_v29  ;;  %657 = vmatprep.subr.bf16.mxu0 %v1080_v56  ;;  %v1105_v29 = vld [vmem:[#allocation10 + $0x58] sm:$0xff]  }
  0x8b   :  { %414 = vmatprep.subr.bf16.mxu1 %v1039_v30  ;;  %v1106_v30 = vld [vmem:[#allocation10 + $0x18] sm:$0xff]  }
  0x8d   :  { %658 = vmatpush1.bf16.msra.mxu0 %v1078_v57 }
  0x8e   :  { %415 = vmatpush1.bf16.msra.mxu1 %v1041_v31  ;;  %659 = vmatprep.subr.bf16.mxu0 %v1083_v58  ;;  %v1107_v31 = vld [vmem:[#allocation10 + $0x60] sm:$0xff]  }
  0x8f   :  { %416 = vmatprep.subr.bf16.mxu1 %v1042_v32  ;;  %v1108_v32 = vld [vmem:[#allocation10 + $0x20] sm:$0xff]  }
  0x91   :  { %660 = vmatpush1.bf16.msra.mxu0 %v1081_v59 }
  0x92   :  { %417 = vmatpush1.bf16.msra.mxu1 %v1044_v33  ;;  %661 = vmatprep.subr.bf16.mxu0 %v1086_v60  ;;  %v1109_v33 = vld [vmem:[#allocation10 + $0x68] sm:$0xff]  }
  0x93   :  { %418 = vmatprep.subr.bf16.mxu1 %v1045_v34  ;;  %v1110_v34 = vld [vmem:[#allocation10 + $0x28] sm:$0xff]  }
  0x95   :  { %662 = vmatpush1.bf16.msra.mxu0 %v1084_v61 }
  0x96   :  { %419 = vmatpush1.bf16.msra.mxu1 %v1047_v35  ;;  %663 = vmatprep.subr.bf16.mxu0 %v1089_v62  ;;  %v218_v35 = vld [vmem:[%s1425_s4] sm:$0x3] }
  0x97   :  { %420 = vmatprep.subr.bf16.mxu1 %v1048_v36  ;;  %v223_v36 = vrot.slane %v218_v35, %v1387_v4 }
  0x99   :  { %664 = vmatpush1.bf16.msra.mxu0 %v1087_v63 }
  0x9a   :  { %421 = vmatpush1.bf16.msra.mxu1 %v1050_v37  ;;  %665 = vmatprep.subr.bf16.mxu0 %v1092_v0  ;;  %v227_v37 = vrot.slane %v218_v35, %v1392_v6 }
  0x9b   :  { %964 = vmatprep.subr.bf16.mxu1 %v1099_v23 }
  0x9d   :  { %666 = vmatpush1.bf16.msra.mxu0 %v1090_v1 }
  0x9e   :  { %667 = vmatprep.subr.bf16.mxu0 %v1095_v19 }
  0xa1   :  { %668 = vmatpush1.bf16.msra.mxu0 %v1093_v20 }
  0xa2   :  { %669 = vmatprep.subr.bf16.mxu0 %v1098_v21 }
  0xa5   :  { %670 = vmatpush1.bf16.msra.mxu0 %v1096_v22 }
 0x136   :  { %v175_v9 = vpop.f32.mrb[0].mxu0 }
 0x137   :  { %v176_v10 = vadd.f32 %v175_v9, %v110_v7  ;;  %v177_v11 = vpop.f32.mrb[1].mxu0 }
 0x138   :  { %v178_v12 = vadd.f32 %v177_v11, %v114_v8  ;;  %v179_v13 = vpop.f32.mrb[2].mxu0 }
 0x139   :  { %v182_v14 = vmax.f32 %v176_v10, 0.0  ;;  %v180_v15 = vpop.f32.mrb[3].mxu0 }
 0x13a   :  { %v183_v16 = vmax.f32 %v178_v12, 0.0 }
 0x13b   :  { %v184_v18 = vpack.c.bf16 %v182_v14, %v182_v14 }
 0x13c   :  { %v185_v17 = vpack.c.bf16 %v183_v16, %v183_v16 }
 0x13e   :  { %422 = vmatprep.mubr.bf16.mxu1 %v185_v17 }
 0x13f   :  { %423 = vmatmul.mubr.bf16.vlgmr.msra.gmra.mrb[0].mxu1 %v184_v18 }
 0x140   :  { %965 = vmatpush3.bf16.msra.mxu1 %v1100_v24 }
 0x141   :  { %966 = vmatprep.subr.bf16.mxu1 %v1101_v25 }
 0x144   :  { %967 = vmatpush3.bf16.msra.mxu1 %v1102_v26 }
 0x145   :  { %968 = vmatprep.subr.bf16.mxu1 %v1103_v27 }
 0x148   :  { %969 = vmatpush3.bf16.msra.mxu1 %v1104_v28 }
 0x149   :  { %970 = vmatprep.subr.bf16.mxu1 %v1105_v29 }
 0x14c   :  { %971 = vmatpush3.bf16.msra.mxu1 %v1106_v30 }
 0x14d   :  { %972 = vmatprep.subr.bf16.mxu1 %v1107_v31 }
 0x150   :  { %973 = vmatpush3.bf16.msra.mxu1 %v1108_v32 }
 0x151   :  { %974 = vmatprep.subr.bf16.mxu1 %v1109_v33 }
 0x154   :  { %975 = vmatpush3.bf16.msra.mxu1 %v1110_v34 }
 0x155   :  { %976 = vmatprep.subr.bf16.mxu1 %v1111_v48 }
 0x158   :  { %977 = vmatpush3.bf16.msra.mxu1 %v1112_v49 }
 0x159   :  { %978 = vmatprep.subr.bf16.mxu1 %v1113_v50 }
 0x15c   :  { %979 = vmatpush3.bf16.msra.mxu1 %v1114_v51 }
 0x212   :  { %v424_v38 = vpop.f32.mrb[0].mxu1 }
 0x213   :  { %v425_v39 = vadd.f32 %v424_v38, %v223_v36  ;;  %v426_v40 = vpop.f32.mrb[1].mxu1 }
 0x214   :  { %v427_v41 = vadd.f32 %v426_v40, %v227_v37  ;;  %v428_v42 = vpop.f32.mrb[2].mxu1 }
 0x215   :  { %v431_v43 = vmax.f32 %v425_v39, 0.0  ;;  %v429_v44 = vpop.f32.mrb[3].mxu1 }
 0x216   :  { %v432_v45 = vmax.f32 %v427_v41, 0.0 }
 0x217   :  { %v433_v47 = vpack.c.bf16 %v431_v43, %v431_v43 }
 0x218   :  { %v434_v46 = vpack.c.bf16 %v432_v45, %v432_v45 }
 0x21a   :  { %671 = vmatprep.mubr.bf16.mxu0 %v434_v46 }
 0x21b   :  { %672 = vmatmul.mubr.bf16.vlgmr.msra.gmra.mrb[4].mxu0 %v433_v47 }
 0x2ee   :  { %v673_v55 = vpop.f32.mrb[4].mxu0 }
 0x2ef   :  { %v674_v56 = vadd.f32 %v673_v55, %v472_v53  ;;  %v675_v57 = vpop.f32.mrb[5].mxu0 }
 0x2f0   :  { %v676_v58 = vadd.f32 %v675_v57, %v476_v54  ;;  %v677_v59 = vpop.f32.mrb[6].mxu0 }
 0x2f1   :  { %v680_v60 = vmax.f32 %v674_v56, 0.0  ;;  %v678_v61 = vpop.f32.mrb[7].mxu0 }
 0x2f2   :  { %v681_v62 = vmax.f32 %v676_v58, 0.0 }
 0x2f3   :  { %v682_v0 = vpack.c.bf16 %v680_v60, %v680_v60 }
 0x2f4   :  { %v683_v63 = vpack.c.bf16 %v681_v62, %v681_v62 }
 0x2f6   :  { %851 = vmatprep.mubr.bf16.mxu1 %v683_v63 }
 0x2f7   :  { %852 = vmatmul.mubr.bf16.vlgmr.msra.gmra.mrb[4].mxu1 %v682_v0 }
 0x3ca   :  { %v980_v1 = vpop.f32.mrb[4].mxu1 }
 0x3cb   :  { %v981_v3 = vpop.f32.mrb[5].mxu1 }
 0x3cc   :  { %v982_v4 = vadd.f32 %v981_v3, %v980_v1  ;;  %v983_v5 = vpop.f32.mrb[6].mxu1 }
 0x3cd   :  { %v984_v6 = vpop.f32.mrb[7].mxu1 }
 0x3ce   :  { %v854_v7 = vadd.f32 %v982_v4, %v947_v2 }
 0x3d0   :  { %1115 = vtanh.f32 %v854_v7 }
 0x3da   :  { %v1116_v8 = vpop.eup %1115 }
 0x3db   :  { %860 = vst [vmem:[#allocation11] sm:$0xff] %v1116_v8 }
 0x3dc   :  { %1238 = shalt.err (!%p1235_p2)
}
 0x3dd   :  { %s1239_s14 = scalar_lea.hbm %s1430_s9, 128 }
 0x3de   :  { %p1240_p3 = scmp.ne.s32.totalorder %s1430_s9, %s1239_s14  ;;  %p1243_p4 = scmp.lt.u32.totalorder %s1239_s14, %s1430_s9 }
 0x3e0   :  { %p1245_p5 = pnand %p1243_p4, %p1240_p3 }
 0x3e2   :  { %1248 = shalt.err (!%p1245_p5)
}
 0x3e3   :  { %870 = dma.vmem_to_hbm [thread:$0]  %s868_s13, 128, %s1430_s9, [#allocation4]  }
 0x3e4   :  { %1255 = dma.done.wait [#allocation4], 128  }
 0x3e5   :  { %1256 = vsyncadd [#allocation4], 4294967168 }
 0x3e6   :  { %874 = vsyncpa [#allocation3], 1 }
 0x3e7   :  { %875 = vsyncpa [#allocation6], 1 }
 0x3e8   :  { %876 = vsyncpa [#allocation9], 1 }
 0x3e9   :  { %877 = vsyncpa [#allocation4], 1 }

</bundles_post_ra>
